<compile_context>
chip_gen: v6e
topology: v6e:2x2x1
jax: 0.10.0
libtpu: 0.0.40
codegen_flags: <defaults>
</compile_context>

<pallas_src>
import jax
import jax.numpy as jnp
from jax.experimental import pallas as pl
from jax.experimental.pallas import tpu as pltpu


def _round_up(a: int, b: int) -> int:
    return (a + b - 1) // b * b


def _hyp_shift_exp_kernel(rho: float, eps: float):
    def kernel(x_ref, xsq_ref, log1m_ref, bt2_ref, bsq_ref, nlmd_ref, out_ref):
        x = x_ref[...]                                   # (tn, d) f32
        # <x, 2b> on the MXU; shift already transposed and pre-scaled by 2.
        xb2 = jax.lax.dot_general(
            x, bt2_ref[...],
            dimension_numbers=(((1,), (0,)), ((), ())),
            preferred_element_type=jnp.float32)          # (tn, tm)
        # |x - b|^2 = |x|^2 + |b|^2 - 2<x,b>, clamped against f32 cancellation.
        dist2 = jnp.maximum(xsq_ref[...] + bsq_ref[...] - xb2, eps)
        log_xb = log1m_ref[...] - jnp.log(dist2)         # (tn, tm)
        amp = jnp.exp(rho * log_xb)
        theta = nlmd_ref[...] * log_xb                   # theta = -lmd * log_xb
        out_ref[0] = amp * jnp.cos(theta)                # real plane
        out_ref[1] = amp * jnp.sin(theta)                # imag plane (sign folded)
    return kernel


def _tile_vmem_bytes(tn: int, tm: int, d: int) -> int:
    """Per-step VMEM: double-buffered input/output tiles + elementwise temps."""
    sub_d = -(-d // 8)
    in_bytes = (tn * 128 * 4            # x tile, lane-padded to 128 lanes
                + 2 * tn * 512          # |x|^2 and log(1-|x|^2) tiles
                + (sub_d + 2) * tm * 32)  # shift^T, |b|^2, -lambda tiles
    out_bytes = 2 * tn * tm * 4         # (2, tn, tm) f32 output tile
    temps = 5 * tn * tm * 4             # xb2, dist2, log_xb, amp, theta
    return 2 * (in_bytes + out_bytes) + temps


def hyp_shift_exp(x, shift, lmd, *, tn=512, tm=1024, planar=False):
    """x: [n, dim], shift: [m, dim], lmd: [m] -> [n, m] complex64.

    With planar=True returns (real, imag) float32 planes of shape [n, m] and
    skips the complex-assembly pass entirely.
    """
    n, d = x.shape
    m, d2 = shift.shape
    assert d == d2 and lmd.shape == (m,)
    rho = (d - 1) / 2.0

    # --- tile sizing (lane-dense output, VMEM-bounded, megacore-friendly) ---
    tn_eff = _round_up(min(int(tn), _round_up(n, 8)), 8)
    tm_eff = _round_up(min(int(tm), _round_up(m, 128)), 128)
    # Keep the per-step working set under ~40 MiB (v7x has only 64 MiB VMEM).
    while _tile_vmem_bytes(tn_eff, tm_eff, d) > (40 << 20) and tm_eff > 128:
        tm_eff = _round_up(tm_eff // 2, 128)
    while _tile_vmem_bytes(tn_eff, tm_eff, d) > (40 << 20) and tn_eff > 8:
        tn_eff = _round_up(tn_eff // 2, 8)

    n_pad = _round_up(n, tn_eff)
    m_pad = _round_up(m, tm_eff)

    # v7x has 2 TensorCores: avoid a 1x1 grid when we can split the n axis.
    if (n_pad // tn_eff == 1 and m_pad // tm_eff == 1
            and n_pad >= 16 and n_pad % 16 == 0):
        tn_eff = n_pad // 2

    xf = x.astype(jnp.float32)
    sf = shift.astype(jnp.float32)
    lf = lmd.astype(jnp.float32)

    # --- hoisted x-side precompute (once, not once per m-tile) ---
    x_p = jnp.pad(xf, ((0, n_pad - n), (0, 0)))                  # (n_pad, d)
    x_sq = jnp.sum(x_p * x_p, axis=1, keepdims=True)             # (n_pad, 1)
    log1m = jnp.log1p(-x_sq)                                     # log(1-|x|^2)

    # --- hoisted shift-side precompute; padded rows use a sentinel point far
    #     outside the ball so padded columns stay finite ---
    shift_p = jnp.pad(sf, ((0, m_pad - m), (0, 0)), constant_values=3.0)
    bt2 = (2.0 * shift_p).T                                      # (d, m_pad)
    b_sq = jnp.sum(shift_p * shift_p, axis=1)[None, :]           # (1, m_pad)
    neg_lmd = -jnp.pad(lf, (0, m_pad - m))[None, :]              # (1, m_pad)

    grid = (n_pad // tn_eff, m_pad // tm_eff)

    vmem_need = _tile_vmem_bytes(tn_eff, tm_eff, d)
    vmem_limit = int(min(max(vmem_need + (8 << 20), 32 << 20), 48 << 20))

    cost = pl.CostEstimate(
        flops=2 * n_pad * m_pad * d + 7 * n_pad * m_pad,
        transcendentals=4 * n_pad * m_pad,
        bytes_accessed=4 * (n_pad * d + 2 * n_pad + d * m_pad + 2 * m_pad
                            + 2 * n_pad * m_pad),
    )

    out = pl.pallas_call(
        _hyp_shift_exp_kernel(rho, float(jnp.finfo(jnp.float32).tiny)),
        out_shape=jax.ShapeDtypeStruct((2, n_pad, m_pad), jnp.float32),
        grid_spec=pltpu.PrefetchScalarGridSpec(
            num_scalar_prefetch=0,
            grid=grid,
            in_specs=[
                pl.BlockSpec((tn_eff, d), lambda i, j: (i, 0)),   # x rows
                pl.BlockSpec((tn_eff, 1), lambda i, j: (i, 0)),   # |x|^2
                pl.BlockSpec((tn_eff, 1), lambda i, j: (i, 0)),   # log(1-|x|^2)
                pl.BlockSpec((d, tm_eff), lambda i, j: (0, j)),   # 2*shift^T
                pl.BlockSpec((1, tm_eff), lambda i, j: (0, j)),   # |b|^2
                pl.BlockSpec((1, tm_eff), lambda i, j: (0, j)),   # -lambda
            ],
            out_specs=pl.BlockSpec((2, tn_eff, tm_eff), lambda i, j: (0, i, j)),
        ),
        compiler_params=pltpu.CompilerParams(
            dimension_semantics=("parallel", "parallel"),
            vmem_limit_bytes=vmem_limit,
        ),
        cost_estimate=cost,
    )(x_p, x_sq, log1m, bt2, b_sq, neg_lmd)

    if planar:
        return out[0, :n, :m], out[1, :n, :m]
    # TODO(synk): Pallas TPU has no complex dtype; complex64 is assembled here
    # in one fused XLA pass over the two f32 planes (use planar=True to avoid it).
    return jax.lax.complex(out[0, :n, :m], out[1, :n, :m])


def _reference(x, shift, lmd):
    """Pure-JAX reference mirroring the torch forward (for a sanity check)."""
    n, d = x.shape
    rho = (d - 1) / 2.0
    diff = x[:, None, :] - shift[None, :, :]                  # (n, m, d)
    x_shift_norm = jnp.sum(diff * diff, axis=-1)              # (n, m)
    denominator = jnp.log(x_shift_norm)
    numerator = jnp.log(1.0 - jnp.sum(x * x, axis=1))         # (n,)
    log_xb = numerator[:, None] - denominator                 # (n, m)
    coeff = -1j * lmd.astype(jnp.complex64) + rho             # (m,)
    return jnp.exp(log_xb.astype(jnp.complex64) * coeff[None, :])


if __name__ == "__main__":
    key = jax.random.PRNGKey(0)
    k1, k2, k3 = jax.random.split(key, 3)

    n, m, dim = 16, 8, 4   # dim == manifold.n, rho = 1.5

    # points strictly inside the Poincare ball
    x = 0.3 * jax.random.uniform(k1, (n, dim), dtype=jnp.float32,
                                 minval=-1.0, maxval=1.0)
    # shift points on the unit sphere (boundary)
    b = jax.random.normal(k2, (m, dim), dtype=jnp.float32)
    b = b / jnp.linalg.norm(b, axis=1, keepdims=True)
    # spectral parameters
    lmd = jax.random.uniform(k3, (m,), dtype=jnp.float32, minval=0.1, maxval=2.0)

    out = hyp_shift_exp(x, b, lmd)
    out = jax.block_until_ready(out)

    ref = jax.block_until_ready(_reference(x, b, lmd))
    assert out.shape == (n, m) and out.dtype == jnp.complex64
    assert jnp.max(jnp.abs(out - ref)) < 1e-4, "mismatch vs reference"
    assert bool(jnp.all(jnp.isfinite(jnp.abs(out)))), "non-finite output"

    print("KERNEL_OK")
</pallas_src>

<mosaic_0001>
module attributes {stable_mosaic.version = 11 : i64} {
  func.func @kernel(%arg0: i32, %arg1: i32, %arg2: memref<8x4xf32, #tpu.memory_space<vmem>>, %arg3: memref<8x1xf32, #tpu.memory_space<vmem>>, %arg4: memref<8x1xf32, #tpu.memory_space<vmem>>, %arg5: memref<4x128xf32, #tpu.memory_space<vmem>>, %arg6: memref<1x128xf32, #tpu.memory_space<vmem>>, %arg7: memref<1x128xf32, #tpu.memory_space<vmem>>, %arg8: memref<2x8x128xf32, #tpu.memory_space<vmem>>) attributes {dimension_semantics = [#tpu.dimension_semantics<parallel>, #tpu.dimension_semantics<parallel>], iteration_bounds = array<i64: 2, 1>, scalar_prefetch = 0 : i64, scratch_operands = 0 : i64, tpu.core_type = #tpu.core_type<tc>, window_params = [{transform_indices = @transform_0, window_bounds = array<i64: 8, 4>}, {transform_indices = @transform_1, window_bounds = array<i64: 8, 1>}, {transform_indices = @transform_2, window_bounds = array<i64: 8, 1>}, {transform_indices = @transform_3, window_bounds = array<i64: 4, 128>}, {transform_indices = @transform_4, window_bounds = array<i64: 1, 128>}, {transform_indices = @transform_5, window_bounds = array<i64: 1, 128>}, {transform_indices = @transform_6, window_bounds = array<i64: 2, 8, 128>}]} {
    %c0 = arith.constant 0 : index
    %c0_0 = arith.constant 0 : index
    %0 = vector.load %arg2[%c0, %c0_0] : memref<8x4xf32, #tpu.memory_space<vmem>>, vector<8x4xf32>
    %c0_1 = arith.constant 0 : index
    %c0_2 = arith.constant 0 : index
    %1 = vector.load %arg5[%c0_1, %c0_2] : memref<4x128xf32, #tpu.memory_space<vmem>>, vector<4x128xf32>
    %cst = arith.constant dense<0.000000e+00> : vector<8x128xf32>
    %2 = tpu.matmul %0, %1, %cst {dimension_numbers = #tpu.dot_dimension_numbers<[1], [0], [0], [1], [0, 0, 1, 1], [], []>} : vector<8x4xf32>, vector<4x128xf32>, vector<8x128xf32> -> vector<8x128xf32>
    %c0_3 = arith.constant 0 : index
    %c0_4 = arith.constant 0 : index
    %3 = vector.load %arg3[%c0_3, %c0_4] : memref<8x1xf32, #tpu.memory_space<vmem>>, vector<8x1xf32>
    %c0_5 = arith.constant 0 : index
    %c0_6 = arith.constant 0 : index
    %4 = vector.load %arg6[%c0_5, %c0_6] : memref<1x128xf32, #tpu.memory_space<vmem>>, vector<1x128xf32>
    %5 = vector.broadcast %3 : vector<8x1xf32> to vector<8x128xf32>
    %6 = vector.broadcast %4 : vector<1x128xf32> to vector<8x128xf32>
    %7 = arith.addf %5, %6 : vector<8x128xf32>
    %8 = arith.subf %7, %2 : vector<8x128xf32>
    %cst_7 = arith.constant 1.17549435E-38 : f32
    %9 = vector.broadcast %cst_7 : f32 to vector<8x128xf32>
    %10 = arith.maximumf %8, %9 : vector<8x128xf32>
    %c0_8 = arith.constant 0 : index
    %c0_9 = arith.constant 0 : index
    %11 = vector.load %arg4[%c0_8, %c0_9] : memref<8x1xf32, #tpu.memory_space<vmem>>, vector<8x1xf32>
    %12 = math.log %10 : vector<8x128xf32>
    %13 = vector.broadcast %11 : vector<8x1xf32> to vector<8x128xf32>
    %14 = arith.subf %13, %12 : vector<8x128xf32>
    %cst_10 = arith.constant 1.500000e+00 : f32
    %15 = vector.broadcast %cst_10 : f32 to vector<8x128xf32>
    %16 = arith.mulf %15, %14 : vector<8x128xf32>
    %17 = math.exp %16 : vector<8x128xf32>
    %c0_11 = arith.constant 0 : index
    %c0_12 = arith.constant 0 : index
    %18 = vector.load %arg7[%c0_11, %c0_12] : memref<1x128xf32, #tpu.memory_space<vmem>>, vector<1x128xf32>
    %19 = vector.broadcast %18 : vector<1x128xf32> to vector<8x128xf32>
    %20 = arith.mulf %19, %14 : vector<8x128xf32>
    %21 = math.cos %20 : vector<8x128xf32>
    %22 = arith.mulf %17, %21 : vector<8x128xf32>
    %c0_13 = arith.constant 0 : index
    %c0_14 = arith.constant 0 : index
    %c0_15 = arith.constant 0 : index
    %23 = vector.load %arg8[%c0_13, %c0_14, %c0_15] : memref<2x8x128xf32, #tpu.memory_space<vmem>>, vector<1x8x128xf32>
    %24 = vector.shape_cast %23 : vector<1x8x128xf32> to vector<8x128xf32>
    %25 = vector.shape_cast %22 : vector<8x128xf32> to vector<1x8x128xf32>
    tpu.vector_store %arg8[%c0_13, %c0_14, %c0_15], %25 {strides = array<i32>} : memref<2x8x128xf32, #tpu.memory_space<vmem>>, vector<1x8x128xf32>,
    %26 = math.sin %20 : vector<8x128xf32>
    %27 = arith.mulf %17, %26 : vector<8x128xf32>
    %c1 = arith.constant 1 : index
    %c0_16 = arith.constant 0 : index
    %c0_17 = arith.constant 0 : index
    %28 = vector.load %arg8[%c1, %c0_16, %c0_17] : memref<2x8x128xf32, #tpu.memory_space<vmem>>, vector<1x8x128xf32>
    %29 = vector.shape_cast %28 : vector<1x8x128xf32> to vector<8x128xf32>
    %30 = vector.shape_cast %27 : vector<8x128xf32> to vector<1x8x128xf32>
    tpu.vector_store %arg8[%c1, %c0_16, %c0_17], %30 {strides = array<i32>} : memref<2x8x128xf32, #tpu.memory_space<vmem>>, vector<1x8x128xf32>,
    return
  }
  func.func @transform_0(%arg0: i32, %arg1: i32) -> (i32, i32) {
    %c0_i32 = arith.constant 0 : i32
    %c0_i32_0 = arith.constant 0 : i32
    return %arg0, %c0_i32 : i32, i32
  }
  func.func @transform_1(%arg0: i32, %arg1: i32) -> (i32, i32) {
    %c0_i32 = arith.constant 0 : i32
    %c0_i32_0 = arith.constant 0 : i32
    return %arg0, %c0_i32 : i32, i32
  }
  func.func @transform_2(%arg0: i32, %arg1: i32) -> (i32, i32) {
    %c0_i32 = arith.constant 0 : i32
    %c0_i32_0 = arith.constant 0 : i32
    return %arg0, %c0_i32 : i32, i32
  }
  func.func @transform_3(%arg0: i32, %arg1: i32) -> (i32, i32) {
    %c0_i32 = arith.constant 0 : i32
    %c0_i32_0 = arith.constant 0 : i32
    return %c0_i32, %arg1 : i32, i32
  }
  func.func @transform_4(%arg0: i32, %arg1: i32) -> (i32, i32) {
    %c0_i32 = arith.constant 0 : i32
    %c0_i32_0 = arith.constant 0 : i32
    return %c0_i32, %arg1 : i32, i32
  }
  func.func @transform_5(%arg0: i32, %arg1: i32) -> (i32, i32) {
    %c0_i32 = arith.constant 0 : i32
    %c0_i32_0 = arith.constant 0 : i32
    return %c0_i32, %arg1 : i32, i32
  }
  func.func @transform_6(%arg0: i32, %arg1: i32) -> (i32, i32, i32) {
    %c0_i32 = arith.constant 0 : i32
    %c0_i32_0 = arith.constant 0 : i32
    return %c0_i32, %arg0, %arg1 : i32, i32, i32
  }
}

</mosaic_0001>

<bundles_post_ra>
// kernel: tpu_custom_call.1
= control target key start
LH: loop header
LB: loop body
LE: loop exit
PB: predicated region body
PF: predicated region fallthrough
CT: control target
= control target key end

     0   :  { %11 = vsyncpa [#allocation3], 0  ;;  %s1216_s0 = inlined_call_operand.vmem [shape: f32[16,4], index: 0, kind: input, shape index: {}]   ;;  %s1217_s1 = inlined_call_operand.vmem [shape: f32[16,1], index: 1, kind: input, shape index: {}]   ;;  %s1218_s2 = inlined_call_operand.vmem [shape: f32[16,1], index: 2, kind: input, shape index: {}]   ;;  %s1219_s3 = inlined_call_operand.vmem [shape: f32[4,128], index: 3, kind: input, shape index: {}]   ;;  %s1220_s4 = inlined_call_operand.vmem [shape: f32[1,128], index: 4, kind: input, shape index: {}]   ;;  %s1221_s5 = inlined_call_operand.vmem [shape: f32[1,128], index: 5, kind: input, shape index: {}]   ;;  %s1222_s6 = inlined_call_operand.hbm [shape: f32[2,16,128], index: 6, kind: output, shape index: {}]  }
   0x1   :  { %13 = vsyncpa [#allocation3 + $0x1], 0  ;;  %s1058_s21 = smov 0   ;;  %s1060_s22 = smov 0  }
   0x2   :  { %s1062_s23 = smov 0   ;;  %s1064_s24 = smov 0  }
   0x3   :  { %s1066_s25 = smov 0   ;;  %s1068_s26 = smov 0  }
   0x4 LB: > { %s816_s27 = sadd.s32 4294967295, %s1008_s26   ;;  %s817_s28 = sadd.s32 4294967294, %s1008_s26   ;;  %s1008_s26 = sphi %s1068_s26, %s19_s26   ;;  %s1004_s25 = sphi %s1066_s25, %s1229_s25   ;;  %s1000_s24 = sphi %s1064_s24, %s1228_s24   ;;  %s996_s23 = sphi %s1062_s23, %s1227_s23   ;;  %s992_s22 = sphi %s1060_s22, %s1226_s22   ;;  %s988_s21 = sphi %s1058_s21, %s1225_s21  }
   0x5   : > { %s31_s29 = sadd.s32 1, %s1004_s25  ;;  %s196_s30 = sadd.s32 1, %s996_s23 }
   0x6   : > { %p33_p0 = scmp.ge.s32.totalorder %s31_s29, 2  ;;  %p206_p1 = scmp.ne.s32.totalorder %s996_s23, %s992_s22 }
   0x7   : > { %p207_p2 = scmp.eq.s32.totalorder %s816_s27, 1  ;;  %p212_p3 = scmp.ne.s32.totalorder %s992_s22, %s988_s21 }
   0x8   : > { %s1231_s29 = smov (%p33_p0, %s31_s29), 0  ;;  %p213_p5 = scmp.eq.s32.totalorder %s817_s28, 1 }
   0x9   : > { %p1098_p4 = por %p207_p2, %p206_p1  ;;  %s191_s8 = ssub.s32 %s1004_s25, %s1231_s29 }
   0xa   : > { %p823_p6 = scmp.ge.s32.totalorder %s1008_s26, 1  ;;  %p194_p7 = scmp.eq.s32.totalorder %s191_s8, 0 }
   0xb   : > { %p1105_p8 = por %p213_p5, %p212_p3  ;;  %p271_p9 = scmp.lt.s32.totalorder %s1008_s26, 3 }
   0xc   : > { %s1111_s10 = scalar_select %p194_p7, %s996_s23, %s196_s30  }
   0xd   : > { %p272_p10 = pnand %p823_p6, %p271_p9 }
   0xe   : > { %p318_p11 = scmp.lt.s32.totalorder (!%p272_p10), %s1000_s24, 1  ;;  %s842_s16 = sshll.u32 (!%p272_p10), %s1000_s24, 7 }
   0xf   : > { %275 = sbr.rel (%p272_p10) target bundleno = 341 (0x155), region = 44 }
  0x14   : > { %v341_v0 = vld [vmem:[%s1219_s3] sm:$0xf]  ;;  %vm346_vm0 = vcmask 1043456   ;;  %v1010_v1 = vmov 0.0   ;;  %vm1011_vm1 = vmmov 0   ;;  %s319_s13 = scalar_select %p318_p11, %s1000_s24, 1 }
  0x15   : > { %847 = vmatprep.subr.mxu0 %v1010_v1  ;;  %849 = vmatprep.mubr.msk.f32.mxu0 %vm1011_vm1, %v1010_v1  ;;  %v1012_v2 = vmov 0   ;;  %vm342_vm2 = vcmask 31744   ;;  %v830_v6 = vld [vmem:[%s1220_s4] ss:$0 sm:$0xff]  ;;  %v1013_v29 = vmov 683565275   ;;  %s1165_s24 = scalar_lea.hbm %s1222_s6, %s842_s16 }
  0x16   : > { %848 = vmatpush3.msk.msra.mxu0 %vm346_vm0, %v341_v0  ;;  %923 = vset.pattern.permute.xlu0 %v1012_v2  ;;  %s825_s14 = sshll.u32 %s319_s13, 3  ;;  %v831_v16 = vld [vmem:[%s1221_s5] ss:$0 sm:$0xff]  ;;  %v1014_v31 = vmov 2475754826  }
  0x17   : > { %s321_s17 = scalar_lea.vmem %s1216_s0, %s825_s14  ;;  %s325_s20 = scalar_lea.vmem %s1217_s1, %s825_s14  ;;  %v1015_v34 = vmov 2131351028   ;;  %v1016_v37 = vmov 2102212464   ;;  %v1017_v40 = vmov 920167782  }
  0x18   : > { %v340_v3 = vld [vmem:[%s321_s17] sm:$0xff]  ;;  %s329_s30 = scalar_lea.vmem %s1218_s2, %s825_s14  ;;  %v1018_v43 = vmov 1326507024   ;;  %s315_s14 = sand.u32 1, %s992_s22  }
  0x19   : > { %v420_v4 = vld [vmem:[%s325_s20] sm:$0xff]  ;;  %850 = vmatmul.mubr.msk.f32.vlgmr.msra.gmra.mxu0 %vm342_vm2, %v340_v3  ;;  %s824_s15 = sshll.u32 %s315_s14, 4  ;;  %s1171_s27 = scalar_lea.sflag [#allocation3], %s315_s14 }
  0x1a   : > { %424 = vperm.xlu0 %923, %v420_v4   ;;  %v436_v5 = vld [vmem:[%s329_s30] sm:$0xff]  ;;  %s317_s17 = scalar_lea.vmem [#allocation2], %s824_s15  ;;  %s1019_s30 = smov [#allocation2]  }
  0x1b   : > { %s682_s18 = sshll.u32 %s317_s17, 4  ;;  %s936_s8 = sshll.u32 %s1019_s30, 4  ;;  %s1167_s18 = int_to_ptr.vmem [resolvable:$true] %s682_s18  ;;  %s937_s8 = int_to_ptr.vmem [resolvable:$false] %s936_s8 }
  0x1c   : > { %s932_s28 = scalar_lea.vmem %s1167_s18, 256  ;;  %s938_s11 = scalar_lea.vmem %s937_s8, 512 }
  0x1d   : > { %p933_p12 = scmp.ne.s32.totalorder %s1167_s18, %s932_s28  ;;  %p939_p1 = scmp.lt.s32.totalorder %s1167_s18, %s937_s8 }
  0x1e   : > { %441 = vperm.xlu0 %923, %v436_v5   ;;  %p940_p2 = scmp.lt.s32.totalorder %s938_s11, %s932_s28 }
  0x1f   : > { %p934_p13 = pnand %p933_p12, %p1098_p4 }
  0x20   : > { %p941_p3 = por %p940_p2, %p939_p1 }
  0x21   : > { %p935_p0 = pneg %p934_p13 }
  0x23   : > { %p942_p5 = pnand %p941_p3, %p935_p0 }
  0x95   : > { %v425_v7 = vpop.permute.xlu0 %424 }
  0x96   : > { %v433_v8 = vadd.f32 %v830_v6, %v425_v7 }
  0x99   : > { %v442_v15 = vpop.permute.xlu0 %441 }
  0xd9   : > { %v416_v9 = vpop.f32.mrf.mxu0 }
  0xda   : > { %v434_v10 = vsub.f32 %v433_v8, %v416_v9 }
  0xdb   : > { %v851_v11 = vpop.f32.mrf.mxu0 }
  0xdc   : > { %v435_v12 = vmax.f32 %v434_v10, 1.1754944e-38 }
  0xde   : > { %924 = vlog2.f32 %v435_v12 }
  0xeb   : > { %v925_v13 = vpop.eup %924 }
  0xec   : > { %v438_v14 = vmul.f32 0.6931472, %v925_v13 }
  0xee   : > { %v1133_v17 = vsub.f32 %v442_v15, %v438_v14 }
  0xf0   : > { %v1136_v18 = vmul.f32 %v831_v16, %v1133_v17 }
  0xf2   : > { %v459_v19 = vand.u32 2139095040, %v1136_v18  ;;  %v456_v23 = vand.u32 2147483647, %v1136_v18  ;;  %vm458_vm10 = vcmp.lt.s32.totalorder %v1136_v18, 0  ;;  %vm548_vm2 = vweird.f32 %v1136_v18 }
  0xf4   : > { %v460_v20 = vshrl.u32 %v459_v19, 23  ;;  %v463_v26 = vand.u32 8388607, %v456_v23  ;;  %vm457_vm11 = vcmp.le.f32.partialorder %v456_v23, 0.7853982 }
  0xf6   : > { %v832_v21 = vadd.s32 4294967169, %v460_v20  ;;  %v464_v45 = vor.u32 8388608, %v463_v26 }
  0xf8   : > { %v466_v22 = vadd.s32 1, %v832_v21  ;;  %v504_v59 = vshll.u32 %v464_v45, 8 }
  0xfa   : > { %vm467_vm3 = vcmp.gt.s32.totalorder %v466_v22, 0 }
  0xfb   : > { %v468_v24 = vsel %vm467_vm3, %v466_v22, 0 }
  0xfc   : > { %v470_v25 = vand.u32 31, %v468_v24  ;;  %v469_v28 = vshrl.u32 %v468_v24, 5 }
  0xfe   : > { %v471_v27 = vsub.s32 32, %v470_v25  ;;  %v473_v30 = vshll.u32 %v1013_v29, %v470_v25  ;;  %v476_v32 = vshll.u32 %v1014_v31, %v470_v25  ;;  %v479_v36 = vshll.u32 %v1015_v34, %v470_v25 }
  0xff   : > { %v482_v39 = vshll.u32 %v1016_v37, %v470_v25  ;;  %v485_v42 = vshll.u32 %v1017_v40, %v470_v25  ;;  %vm488_vm4 = vcmp.lt.s32.totalorder %v469_v28, 1  ;;  %vm491_vm5 = vcmp.lt.s32.totalorder %v469_v28, 4 }
 0x100   : > { %v474_v33 = vshrl.u32 %v1014_v31, %v471_v27  ;;  %v477_v35 = vshrl.u32 %v1015_v34, %v471_v27  ;;  %v480_v38 = vshrl.u32 %v1016_v37, %v471_v27  ;;  %v483_v41 = vshrl.u32 %v1017_v40, %v471_v27 }
 0x101   : > { %v486_v44 = vshrl.u32 %v1018_v43, %v471_v27  ;;  %v472_v54 = vshrl.u32 %v1013_v29, %v471_v27  ;;  %vm490_vm6 = vcmp.lt.s32.totalorder %v469_v28, 3  ;;  %vm489_vm7 = vcmp.lt.s32.totalorder %v469_v28, 2 }
 0x102   : > { %v475_v46 = vor.u32 %v474_v33, %v473_v30  ;;  %v478_v47 = vor.u32 %v477_v35, %v476_v32  ;;  %v481_v48 = vor.u32 %v480_v38, %v479_v36  ;;  %v484_v49 = vor.u32 %v483_v41, %v482_v39 }
 0x103   : > { %v487_v50 = vor.u32 %v486_v44, %v485_v42  ;;  %v445_v35 = vmul.f32 1.5, %v1133_v17 }
 0x104   : > { %v493_v51 = vsel %vm491_vm5, %v481_v48, 2102212464  ;;  %v496_v52 = vsel %vm488_vm4, %v475_v46, %v478_v47  ;;  %v500_v53 = vsel %vm488_vm4, %v478_v47, %v481_v48  ;;  %v497_v55 = vsel %vm491_vm5, %v484_v49, 920167782 }
 0x105   : > { %v501_v56 = vsel %vm491_vm5, %v487_v50, 1326507024  ;;  %v498_v57 = vsel %vm490_vm6, %v481_v48, %v497_v55  ;;  %v492_v60 = vsel %vm488_vm4, %v472_v54, %v475_v46  ;;  %v494_v61 = vsel %vm490_vm6, %v478_v47, %v493_v51 }
 0x106   : > { %v502_v58 = vsel %vm490_vm6, %v484_v49, %v501_v56  ;;  %v499_v62 = vsel %vm489_vm7, %v496_v52, %v498_v57  ;;  %v495_v4 = vsel %vm489_vm7, %v492_v60, %v494_v61  ;;  %v446_v39 = vmul.f32 1.442695, %v445_v35 }
 0x107   : > { %v503_v63 = vsel %vm489_vm7, %v500_v53, %v502_v58  ;;  %v1145_v2 = vmul.u32.u64.low %v504_v59, %v499_v62  ;;  %v1146_v3 = vmul.u32.u64.high %v504_v59, %v499_v62, %v1145_v2  ;;  %v511_v6 = vmul.u32 %v504_v59, %v495_v4 }
 0x108   : > { %v1142_v0 = vmul.u32.u64.low %v504_v59, %v503_v63  ;;  %v1143_v1 = vmul.u32.u64.high %v504_v59, %v503_v63, %v1142_v0 }
 0x109   : > { %v514_v5 = vadd.s32 1, %v1146_v3 }
 0x10a   : > { %vm513_vm8 = vc.u32 %v1143_v1, %v1145_v2  ;;  %v512_v20 = vadd.s32 %v1145_v2, %v1143_v1 }
 0x10b   : > { %v515_v7 = vsel %vm513_vm8, %v514_v5, %v1146_v3 }
 0x10c   : > { %v516_v8 = vadd.s32 %v515_v7, %v511_v6 }
 0x10e   : > { %v517_v9 = vadd.s32 536870912, %v516_v8 }
 0x110   : > { %v518_v10 = vshrl.u32 %v517_v9, 30 }
 0x112   : > { %v519_v11 = vshll.u32 %v518_v10, 30  ;;  %v542_v34 = vsub.s32 4, %v518_v10 }
 0x114   : > { %v520_v12 = vsub.s32 %v516_v8, %v519_v11  ;;  %v543_v38 = vsel %vm458_vm10, %v542_v34, %v518_v10 }
 0x115   : > { %v545_v40 = vsel %vm457_vm11, 0, %v543_v38 }
 0x116   : > { %v522_v13 = vsub.s32 0, %v520_v12  ;;  %v654_v41 = vadd.s32 3, %v545_v40  ;;  %v549_v42 = vand.u32 3, %v545_v40 }
 0x118   : > { %v833_v14 = vmin.u32 %v522_v13, %v520_v12  ;;  %v655_v43 = vand.u32 3, %v654_v41  ;;  %vm554_vm12 = vcmp.eq.s32.totalorder %v549_v42, 2  ;;  %vm551_vm14 = vcmp.eq.s32.totalorder %v549_v42, 0 }
 0x119   : > { %vm550_vm0 = vcmp.lt.s32.totalorder %v549_v42, 2 }
 0x11a   : > { %v524_v15 = vclz %v833_v14  ;;  %vm660_vm13 = vcmp.eq.s32.totalorder %v655_v43, 2  ;;  %vm657_vm15 = vcmp.eq.s32.totalorder %v655_v43, 0  ;;  %vm656_vm1 = vcmp.lt.s32.totalorder %v655_v43, 2 }
 0x11c   : > { %v834_v16 = vadd.s32 4294967294, %v524_v15 }
 0x11e   : > { %vm835_vm9 = vcmp.lt.s32.totalorder %v834_v16, 0 }
 0x11f   : > { %v527_v19 = vsel %vm835_vm9, 0, %v834_v16 }
 0x120   : > { %v528_v21 = vsub.s32 32, %v527_v19  ;;  %v532_v22 = vsub.s32 4294967266, %v527_v19  ;;  %v529_v24 = vshll.u32 %v520_v12, %v527_v19 }
 0x122   : > { %v530_v25 = vshrl.u32 %v512_v20, %v528_v21  ;;  %v533_v26 = vadd.s32 127, %v532_v22 }
 0x124   : > { %v531_v27 = vor.u32 %v530_v25, %v529_v24  ;;  %v534_v28 = vshll.u32 %v533_v26, 23 }
 0x126   : > { %v535_v29 = vor.u32 4788187, %v534_v28  ;;  %v538_v31 = vcvt.s32.f32 %v531_v27 }
 0x128   : > { %v536_v30 = vand.u32 2147483647, %v535_v29 }
 0x12a   : > { %v539_v32 = vmul.f32 %v538_v31, %v536_v30 }
 0x12c   : > { %v540_v33 = vxor.u32 2147483648, %v539_v32 }
 0x12e   : > { %v541_v36 = vsel %vm458_vm10, %v540_v33, %v539_v32 }
 0x12f   : > { %v544_v37 = vsel %vm457_vm11, %v1136_v18, %v541_v36 }
 0x130   : > { %926 = vcosq.f32 %v544_v37 }
 0x131   : > { %928 = vsinq.f32 %v544_v37 }
 0x132   : > { %930 = vpow2.f32 %v446_v39 }
 0x13d   : > { %v927_v17 = vpop.eup %926 }
 0x13e   : > { %v929_v44 = vpop.eup %928  ;;  %v555_v45 = vxor.u32 2147483648, %v927_v17 }
 0x13f   : > { %v552_v23 = vxor.u32 2147483648, %v929_v44  ;;  %v931_v52 = vpop.eup %930 }
 0x140   : > { %v556_v46 = vsel %vm554_vm12, %v555_v45, %v929_v44  ;;  %v662_v47 = vsel %vm660_vm13, %v555_v45, %v929_v44 }
 0x141   : > { %v553_v48 = vsel %vm551_vm14, %v927_v17, %v552_v23  ;;  %v659_v49 = vsel %vm657_vm15, %v927_v17, %v552_v23 }
 0x142   : > { %v557_v50 = vsel %vm550_vm0, %v553_v48, %v556_v46  ;;  %v663_v51 = vsel %vm656_vm1, %v659_v49, %v662_v47 }
 0x143   : > { %v558_v53 = vsel %vm548_vm2, nan, %v557_v50  ;;  %v664_v54 = vsel %vm548_vm2, nan, %v663_v51 }
 0x144   : > { %v559_v55 = vmul.f32 %v931_v52, %v558_v53  ;;  %v665_v56 = vmul.f32 %v931_v52, %v664_v54 }
 0x146   : > { %560 = vst [vmem:[%s317_s17] sm:$0xff] %v559_v55  ;;  %840 = vst [vmem:[%s317_s17 + $0x8] sm:$0xff] %v665_v56 }
 0x147   : > { %945 = shalt.err (!%p942_p5)
}
 0x148   : > { %s946_s12 = scalar_lea.hbm %s1165_s24, 256  ;;  %s950_s15 = scalar_lea.hbm %s1222_s6, 512 }
 0x149   : > { %p947_p6 = scmp.ne.s32.totalorder %s1165_s24, %s946_s12  ;;  %p951_p10 = scmp.lt.s32.totalorder %s1165_s24, %s1222_s6 }
 0x14a   : > { %p952_p11 = scmp.lt.s32.totalorder %s950_s15, %s946_s12 }
 0x14b   : > { %p948_p7 = pnand %p947_p6, %p1098_p4 }
 0x14c   : > { %p953_p12 = por %p952_p11, %p951_p10 }
 0x14d   : > { %p949_p9 = pneg %p948_p7 }
 0x14f   : > { %p954_p13 = pnand %p953_p12, %p949_p9 }
 0x151   : > { %957 = shalt.err (!%p954_p13)
}
 0x152   : > { %s1020_s19 = smov 128   ;;  %s1021_s20 = smov 256  }
 0x153   : > { %s1022_s28 = smov 8  }
 0x154   : > { %856 = dma.vmem_to_hbm [thread:$0]  (%p1098_p4), %s1167_s18, 256, %s1165_s24, %s1171_s27, %s1020_s19, %s1021_s20, %s1022_s28  }
 0x155 PF: > { %p862_p0 = scmp.ge.s32.totalorder %s1008_s26, 2  ;;  %s697_s30 = sand.u32 1, %s988_s21  }
 0x156   : > { %s698_s8 = scalar_lea.sflag [#allocation3], %s697_s30 }
 0x157   : > { %p859_p1 = pnand %p862_p0, %p1105_p8 }
 0x159   : > { %p860_p2 = pneg %p859_p1 }
 0x15b   : > { %983 = dma.done.wait (%p860_p2), %s698_s8, 256  }
 0x15c   : > { %985 = vsyncadd (%p860_p2), %s698_s8, 4294967040  ;;  %s19_s26 = sadd.s32 1, %s1008_s26   ;;  %s1225_s21 = smov %s992_s22 }
 0x15d   : > { %p16_p3 = scmp.ge.s32.totalorder %s19_s26, 4   ;;  %s1226_s22 = smov %s996_s23 }
 0x15e   : > { %s1227_s23 = smov %s1111_s10  ;;  %s1228_s24 = smov %s1004_s25 }
 0x15f   : > { %s1229_s25 = smov %s1231_s29  ;;  %18 = sbr.rel (!%p16_p3) target bundleno = 4 (0x4), region = 95 }
 0x164   :  { %703 = vsyncpa [#allocation3], 1 }
 0x165   :  { %705 = vsyncpa [#allocation3 + $0x1], 1 }

</bundles_post_ra>
